<compile_context>
chip_gen: v7x
topology: tpu7x:2x2x1
jax: 0.10.0
libtpu: 0.0.40
codegen_flags: <defaults>
</compile_context>

<pallas_src>
import functools

import numpy as np
import jax
import jax.numpy as jnp
from jax import lax
from jax.experimental import pallas as pl
from jax.experimental.pallas import tpu as pltpu


# --------------------------------------------------------------------------
# Kernel 1: O(n^2) precompute (single invocation, everything VMEM resident).
# --------------------------------------------------------------------------
def rnc_precompute_kernel(f_ref, fT_ref, lab_ref, labT_ref,
                          ldiff_ref, eod_ref, const_ref,
                          *, neg_inv_t, n, d_label):
    # L1 label distances: ldiff[i, j] = sum_d |lab[i, d] - lab[j, d]|.
    ldiff = jnp.zeros((n, n), jnp.float32)
    for d in range(d_label):                            # d_label tiny & static
        col = lab_ref[:, d:d + 1].astype(jnp.float32)   # (n, 1)
        row = labT_ref[d:d + 1, :].astype(jnp.float32)  # (1, n)
        ldiff = ldiff + jnp.abs(col - row)
    ldiff_ref[...] = ldiff

    # Pairwise feature L2 distances: cross term on the MXU in f32; both row
    # norms computed exactly in f32 on the VPU (never off the Gram diagonal).
    f = f_ref[...].astype(jnp.float32)                  # (n, d)
    ft = fT_ref[...].astype(jnp.float32)                # (d, n)
    g = lax.dot_general(f, f, (((1,), (1,)), ((), ())),
                        preferred_element_type=jnp.float32)       # (n, n)
    rn_col = jnp.sum(f * f, axis=1, keepdims=True)                # (n, 1)
    rn_row = jnp.sum(ft * ft, axis=0, keepdims=True)              # (1, n)

    ri = lax.broadcasted_iota(jnp.int32, (n, n), 0)
    ci = lax.broadcasted_iota(jnp.int32, (n, n), 1)
    diag = ri == ci
    sq = jnp.maximum(rn_col + rn_row - 2.0 * g, 0.0)    # clamp fp cancellation
    sq = jnp.where(diag, 0.0, sq)                       # exact zeros on diag
    # logits = -dist / t.  The reference's row-max subtraction is exactly 0
    # (the per-row max is the diagonal zero), so it is omitted.
    logits = jnp.sqrt(sq) * neg_inv_t
    eod = jnp.where(diag, 0.0, jnp.exp(logits))         # diagonal hoisted out
    eod_ref[...] = eod

    # Correction terms for the k == i columns dropped from the cubic sweep:
    #   denom[i, i] = rowsum(eod)[i]  because ldiff[i, i] = 0 <= ldiff[i, j].
    s_logits = jnp.sum(logits, keepdims=True)                       # (1, 1)
    s_corr = jnp.sum(jnp.log(jnp.sum(eod, axis=1, keepdims=True)),
                     keepdims=True)                                 # (1, 1)
    const_ref[...] = s_logits + s_corr


# --------------------------------------------------------------------------
# Kernel 2: O(n^3) log-denominator sweep, one row tile per grid step.
# --------------------------------------------------------------------------
def rnc_logdenom_kernel(ldiff_ref, eod_ref, part_ref):
    ld = ldiff_ref[...]                                 # (rt, n)
    eo = eod_ref[...]                                   # (rt, n)
    # cmp[r, j, k] = (ldiff[i, j] >= ldiff[i, k]); j is the sublane axis so
    # the O(n^3) reduction is VALU vreg-adds + one 8-wide XLU reduce per
    # output vreg (reduction moved off the cross-lane XLU path).
    cmp = ld[:, :, None] >= ld[:, None, :]              # (rt, n_j, n_k)
    w = jnp.where(cmp, eo[:, :, None], 0.0)
    denom = jnp.sum(w, axis=1)                          # (rt, n_k)
    # NOTE: log(denom) could be -inf only if a whole comparison row underflows;
    # the PyTorch reference has identical behaviour (its row-max shift is 0).
    part_ref[...] = jnp.sum(jnp.log(denom), keepdims=True)[None]   # (1, 1, 1)


# --------------------------------------------------------------------------
# Wrapper.
# --------------------------------------------------------------------------
def _vmem_budget_bytes():
    """Generation-aware transient budget for the cubic sweep (conservative)."""
    try:
        cap = int(pltpu.get_tpu_info().vmem_capacity_bytes)
    except Exception:
        cap = 64 * 1024 * 1024          # v7x-safe fallback
    return max(2 * 1024 * 1024, min(16 * 1024 * 1024, cap // 8))


def _pick_row_tile(n):
    """Largest row tile (multiple of 8, dividing n) whose transients fit."""
    budget = _vmem_budget_bytes()
    # ~6 (rt, n, n) f32-equivalent transients live in the sweep (broadcasts,
    # compare mask, selected weights).
    cap = max(1, budget // (6 * 4 * n * n))
    for cand in (64, 32, 16, 8):
        if cand <= cap and n % cand == 0:
            return cand
    return n                             # tiny n: single full-size block


def rnc_loss(features, labels, temperature=2.0):
    n, _ = features.shape
    n2, d_label = labels.shape
    assert n == n2 and n >= 2
    inv_norm = 1.0 / float(n * (n - 1))
    row_tile = _pick_row_tile(n)
    num_tiles = n // row_tile

    features = features.astype(jnp.float32)
    labels = labels.astype(jnp.float32)
    features_t = jnp.transpose(features)   # (d, n): layout plumbing only
    labels_t = jnp.transpose(labels)       # (d_label, n)

    # ---- call 1: O(n^2) precompute -------------------------------------
    ldiff, eod, const = pl.pallas_call(
        functools.partial(rnc_precompute_kernel,
                          neg_inv_t=-1.0 / float(temperature),
                          n=n, d_label=d_label),
        out_shape=(jax.ShapeDtypeStruct((n, n), jnp.float32),   # ldiff
                   jax.ShapeDtypeStruct((n, n), jnp.float32),   # eod
                   jax.ShapeDtypeStruct((1, 1), jnp.float32)),  # S_logits+S_corr
    )(features, features_t, labels, labels_t)

    # ---- call 2: O(n^3) sweep, parallel over row tiles (megacore on v7x) --
    partials = pl.pallas_call(
        rnc_logdenom_kernel,
        out_shape=jax.ShapeDtypeStruct((num_tiles, 1, 1), jnp.float32),
        grid_spec=pltpu.PrefetchScalarGridSpec(
            num_scalar_prefetch=0,
            grid=(num_tiles,),
            in_specs=[pl.BlockSpec((row_tile, n), lambda i: (i, 0)),
                      pl.BlockSpec((row_tile, n), lambda i: (i, 0))],
            out_specs=pl.BlockSpec((1, 1, 1), lambda i: (i, 0, 0))),
        compiler_params=pltpu.CompilerParams(
            dimension_semantics=("parallel",),
            vmem_limit_bytes=32 * 1024 * 1024),
    )(ldiff, eod)

    # loss = inv_norm * (sum_{all i,k} log(denom) - S_logits - S_corr)
    return (jnp.sum(partials) - const[0, 0]) * inv_norm


# --------------------------------------------------------------------------
# NumPy reference mirroring the PyTorch forward exactly (incl. the k-loop).
# --------------------------------------------------------------------------
def rnc_loss_ref(features, labels, temperature=2.0):
    features = np.asarray(features, dtype=np.float32)
    labels = np.asarray(labels, dtype=np.float32)
    n = features.shape[0]
    ldiff = np.sum(np.abs(labels[:, None, :] - labels[None, :, :]), axis=-1)
    dist = np.linalg.norm(features[:, None, :] - features[None, :, :], axis=-1)
    logits = -dist / temperature
    logits = logits - logits.max(axis=1, keepdims=True)
    exp_logits = np.exp(logits)
    offdiag = ~np.eye(n, dtype=bool)
    logits_od = logits[offdiag].reshape(n, n - 1)
    exp_od = exp_logits[offdiag].reshape(n, n - 1)
    ldiff_od = ldiff[offdiag].reshape(n, n - 1)
    loss = 0.0
    for k in range(n - 1):
        pos_logits = logits_od[:, k]
        pos_ld = ldiff_od[:, k]
        neg_mask = (ldiff_od >= pos_ld[:, None]).astype(np.float32)
        pos_log_probs = pos_logits - np.log((neg_mask * exp_od).sum(axis=-1))
        loss += -(pos_log_probs / (n * (n - 1))).sum()
    return loss


if __name__ == "__main__":
    key = jax.random.PRNGKey(0)
    kf, kl = jax.random.split(key)
    # n matches bs=128 of the original script; (n, n) slabs are lane-dense.
    n, d_feat, d_label = 128, 64, 2
    features = jax.random.normal(kf, (n, d_feat), dtype=jnp.float32)
    labels = jax.random.normal(kl, (n, d_label), dtype=jnp.float32)

    loss = rnc_loss(features, labels, temperature=2.0)
    jax.block_until_ready(loss)

    ref = rnc_loss_ref(features, labels, temperature=2.0)
    # Tolerance tightened vs. the previous bf16-Gram version (f32 Gram + exact
    # f32 row norms now).
    assert abs(float(loss) - float(ref)) < 5e-3 * max(1.0, abs(float(ref))), (
        float(loss), float(ref))
    print("KERNEL_OK")
</pallas_src>

<mosaic_0001>
module attributes {stable_mosaic.version = 11 : i64} {
  func.func @rnc_precompute_kernel(%arg0: memref<128x64xf32, #tpu.memory_space<vmem>>, %arg1: memref<64x128xf32, #tpu.memory_space<vmem>>, %arg2: memref<128x2xf32, #tpu.memory_space<vmem>>, %arg3: memref<2x128xf32, #tpu.memory_space<vmem>>, %arg4: memref<128x128xf32, #tpu.memory_space<vmem>>, %arg5: memref<128x128xf32, #tpu.memory_space<vmem>>, %arg6: memref<1x1xf32, #tpu.memory_space<vmem>>) attributes {dimension_semantics = [], scalar_prefetch = 0 : i64, scratch_operands = 0 : i64, tpu.core_type = #tpu.core_type<tc>} {
    %cst = arith.constant 0.000000e+00 : f32
    %0 = vector.broadcast %cst : f32 to vector<128x128xf32>
    %c0 = arith.constant 0 : index
    %c0_0 = arith.constant 0 : index
    %1 = vector.load %arg2[%c0, %c0_0] : memref<128x2xf32, #tpu.memory_space<vmem>>, vector<128x1xf32>
    %c0_1 = arith.constant 0 : index
    %c0_2 = arith.constant 0 : index
    %2 = vector.load %arg3[%c0_1, %c0_2] : memref<2x128xf32, #tpu.memory_space<vmem>>, vector<1x128xf32>
    %3 = vector.broadcast %1 : vector<128x1xf32> to vector<128x128xf32>
    %4 = vector.broadcast %2 : vector<1x128xf32> to vector<128x128xf32>
    %5 = arith.subf %3, %4 : vector<128x128xf32>
    %6 = math.absf %5 : vector<128x128xf32>
    %7 = arith.addf %0, %6 : vector<128x128xf32>
    %c0_3 = arith.constant 0 : index
    %c1 = arith.constant 1 : index
    %8 = vector.load %arg2[%c0_3, %c1] : memref<128x2xf32, #tpu.memory_space<vmem>>, vector<128x1xf32>
    %c1_4 = arith.constant 1 : index
    %c0_5 = arith.constant 0 : index
    %9 = vector.load %arg3[%c1_4, %c0_5] : memref<2x128xf32, #tpu.memory_space<vmem>>, vector<1x128xf32>
    %10 = vector.broadcast %8 : vector<128x1xf32> to vector<128x128xf32>
    %11 = vector.broadcast %9 : vector<1x128xf32> to vector<128x128xf32>
    %12 = arith.subf %10, %11 : vector<128x128xf32>
    %13 = math.absf %12 : vector<128x128xf32>
    %14 = arith.addf %7, %13 : vector<128x128xf32>
    %c0_6 = arith.constant 0 : index
    %c0_7 = arith.constant 0 : index
    %15 = vector.load %arg4[%c0_6, %c0_7] : memref<128x128xf32, #tpu.memory_space<vmem>>, vector<128x128xf32>
    tpu.vector_store %arg4[%c0_6, %c0_7], %14 {strides = array<i32>} : memref<128x128xf32, #tpu.memory_space<vmem>>, vector<128x128xf32>,
    %c0_8 = arith.constant 0 : index
    %c0_9 = arith.constant 0 : index
    %16 = vector.load %arg0[%c0_8, %c0_9] : memref<128x64xf32, #tpu.memory_space<vmem>>, vector<128x64xf32>
    %c0_10 = arith.constant 0 : index
    %c0_11 = arith.constant 0 : index
    %17 = vector.load %arg1[%c0_10, %c0_11] : memref<64x128xf32, #tpu.memory_space<vmem>>, vector<64x128xf32>
    %cst_12 = arith.constant dense<0.000000e+00> : vector<128x128xf32>
    %18 = tpu.matmul %16, %16, %cst_12 {dimension_numbers = #tpu.dot_dimension_numbers<[1], [1], [0], [0], [0, 0, 1, 0], [], []>} : vector<128x64xf32>, vector<128x64xf32>, vector<128x128xf32> -> vector<128x128xf32>
    %19 = arith.mulf %16, %16 : vector<128x64xf32>
    %cst_13 = arith.constant dense<0.000000e+00> : vector<128xf32>
    %20 = vector.multi_reduction <add>, %19, %cst_13 [1] : vector<128x64xf32> to vector<128xf32>
    %21 = vector.shape_cast %20 : vector<128xf32> to vector<128x1xf32>
    %22 = arith.mulf %17, %17 : vector<64x128xf32>
    %cst_14 = arith.constant dense<0.000000e+00> : vector<128xf32>
    %23 = vector.multi_reduction <add>, %22, %cst_14 [0] : vector<64x128xf32> to vector<128xf32>
    %24 = vector.shape_cast %23 : vector<128xf32> to vector<1x128xf32>
    %25 = tpu.iota {dimensions = array<i32: 0>} : vector<128x128xi32>
    %26 = tpu.iota {dimensions = array<i32: 1>} : vector<128x128xi32>
    %27 = arith.cmpi eq, %25, %26 : vector<128x128xi32>
    %28 = vector.broadcast %21 : vector<128x1xf32> to vector<128x128xf32>
    %29 = vector.broadcast %24 : vector<1x128xf32> to vector<128x128xf32>
    %30 = arith.addf %28, %29 : vector<128x128xf32>
    %cst_15 = arith.constant 2.000000e+00 : f32
    %31 = vector.broadcast %cst_15 : f32 to vector<128x128xf32>
    %32 = arith.mulf %31, %18 : vector<128x128xf32>
    %33 = arith.subf %30, %32 : vector<128x128xf32>
    %cst_16 = arith.constant 0.000000e+00 : f32
    %34 = vector.broadcast %cst_16 : f32 to vector<128x128xf32>
    %35 = arith.maximumf %33, %34 : vector<128x128xf32>
    %cst_17 = arith.constant 0.000000e+00 : f32
    %36 = vector.broadcast %cst_17 : f32 to vector<128x128xf32>
    %37 = arith.select %27, %36, %35 : vector<128x128xi1>, vector<128x128xf32>
    %38 = math.sqrt %37 : vector<128x128xf32>
    %cst_18 = arith.constant -5.000000e-01 : f32
    %39 = vector.broadcast %cst_18 : f32 to vector<128x128xf32>
    %40 = arith.mulf %38, %39 : vector<128x128xf32>
    %41 = math.exp %40 : vector<128x128xf32>
    %cst_19 = arith.constant 0.000000e+00 : f32
    %42 = vector.broadcast %cst_19 : f32 to vector<128x128xf32>
    %43 = arith.select %27, %42, %41 : vector<128x128xi1>, vector<128x128xf32>
    %c0_20 = arith.constant 0 : index
    %c0_21 = arith.constant 0 : index
    %44 = vector.load %arg5[%c0_20, %c0_21] : memref<128x128xf32, #tpu.memory_space<vmem>>, vector<128x128xf32>
    tpu.vector_store %arg5[%c0_20, %c0_21], %43 {strides = array<i32>} : memref<128x128xf32, #tpu.memory_space<vmem>>, vector<128x128xf32>,
    %45 = vector.shape_cast %40 : vector<128x128xf32> to vector<1x128x128xf32>
    %cst_22 = arith.constant dense<0.000000e+00> : vector<1xf32>
    %46 = vector.multi_reduction <add>, %45, %cst_22 [1, 2] : vector<1x128x128xf32> to vector<1xf32>
    %47 = vector.shape_cast %46 : vector<1xf32> to vector<1x1x1xf32>
    %48 = vector.extract %47[0, 0, 0] : f32 from vector<1x1x1xf32>
    %49 = vector.broadcast %48 : f32 to vector<1x1xf32>
    %cst_23 = arith.constant dense<0.000000e+00> : vector<128xf32>
    %50 = vector.multi_reduction <add>, %43, %cst_23 [1] : vector<128x128xf32> to vector<128xf32>
    %51 = vector.shape_cast %50 : vector<128xf32> to vector<128x1xf32>
    %52 = math.log %51 : vector<128x1xf32>
    %53 = vector.shape_cast %52 : vector<128x1xf32> to vector<1x128x1xf32>
    %cst_24 = arith.constant dense<0.000000e+00> : vector<1xf32>
    %54 = vector.multi_reduction <add>, %53, %cst_24 [1, 2] : vector<1x128x1xf32> to vector<1xf32>
    %55 = vector.shape_cast %54 : vector<1xf32> to vector<1x1x1xf32>
    %56 = vector.extract %55[0, 0, 0] : f32 from vector<1x1x1xf32>
    %57 = vector.broadcast %56 : f32 to vector<1x1xf32>
    %58 = arith.addf %49, %57 : vector<1x1xf32>
    %c0_25 = arith.constant 0 : index
    %c0_26 = arith.constant 0 : index
    %59 = vector.load %arg6[%c0_25, %c0_26] : memref<1x1xf32, #tpu.memory_space<vmem>>, vector<1x1xf32>
    tpu.vector_store %arg6[%c0_25, %c0_26], %58 {strides = array<i32>} : memref<1x1xf32, #tpu.memory_space<vmem>>, vector<1x1xf32>,
    return
  }
}

</mosaic_0001>

<bundles_post_ra>
// kernel: tpu_custom_call.1
= control target key start
LH: loop header
LB: loop body
LE: loop exit
PB: predicated region body
PF: predicated region fallthrough
CT: control target
= control target key end

     0   :  { %12 = vsyncpa [#allocation3], 0  ;;  %vm328_vm0 = vcmask 523264   ;;  %s2402_s0 = inlined_call_operand.vmem [shape: f32[128,64], index: 0, kind: input, shape index: {}]   ;;  %s2403_s1 = inlined_call_operand.vmem [shape: f32[64,128], index: 1, kind: input, shape index: {}]   ;;  %s2404_s2 = inlined_call_operand.vmem [shape: f32[128,2], index: 2, kind: input, shape index: {}]   ;;  %s2405_s3 = inlined_call_operand.vmem [shape: f32[2,128], index: 3, kind: input, shape index: {}]   ;;  %s2406_s4 = inlined_call_operand.hbm [shape: f32[128,128], index: 4, kind: output, shape index: {0}]   ;;  %s2407_s5 = inlined_call_operand.hbm [shape: f32[128,128], index: 5, kind: output, shape index: {1}]   ;;  %s2408_s6 = inlined_call_operand.hbm [shape: f32[1,1], index: 6, kind: output, shape index: {2}]  }
   0x1   :  { %v304_v0 = vld [vmem:[%s2402_s0] sm:$0xff]  ;;  %v1508_v1 = vld [vmem:[%s2402_s0 + $0x8] sm:$0xff]  ;;  %v1513_v2 = vld [vmem:[%s2402_s0 + $0x10] sm:$0xff] }
   0x2   :  { %v1215_v3 = vpack.c.bf16 %v1508_v1, %v304_v0  ;;  %vm1518_vm1 = vmpackc.low %vm328_vm0, %vm328_vm0  ;;  %v1525_v5 = vld [vmem:[%s2402_s0 + $0x18] sm:$0xff]  ;;  %1191 = vmatprep.mubr.msk.f32.mxu0 %vm328_vm0, %v304_v0  ;;  %v524_v6 = vmul.f32 %v1513_v2, %v1513_v2  ;;  %v522_v7 = vmul.f32 %v304_v0, %v304_v0  ;;  %v523_v12 = vmul.f32 %v1508_v1, %v1508_v1  ;;  %v312_v13 = vld [vmem:[%s2402_s0 + $0x40] sm:$0xff] }
   0x3   :  { %v1221_v8 = vpack.c.bf16 %v1525_v5, %v1513_v2  ;;  %v525_v10 = vmul.f32 %v1525_v5, %v1525_v5  ;;  %v1556_v14 = vld [vmem:[%s2402_s0 + $0x20] sm:$0xff]  ;;  %v1561_v15 = vld [vmem:[%s2402_s0 + $0x28] sm:$0xff]  ;;  %1203 = vmatprep.mubr.msk.f32.mxu1 %vm328_vm0, %v312_v13 }
   0x4   :  { %1217 = vmatprep.subr.msk.bf16.mxu0 %vm1518_vm1, %v1215_v3  ;;  %1263 = vmatprep.subr.msk.bf16.mxu1 %vm1518_vm1, %v1215_v3  ;;  %v544_v9 = vsel %vm328_vm0, %v524_v6, 0.0  ;;  %v538_v11 = vsel %vm328_vm0, %v522_v7, 0.0  ;;  %v527_v17 = vmul.f32 %v1561_v15, %v1561_v15  ;;  %v541_v18 = vsel %vm328_vm0, %v523_v12, 0.0 }
   0x5   :  { %1220 = vmatpush3.bf16.xpose.msk.msra.mxu0 %vm1518_vm1, %v1215_v3  ;;  %1271 = vmatpush3.bf16.xpose.msk.msra.mxu1 %vm1518_vm1, %v1215_v3  ;;  %v547_v16 = vsel %vm328_vm0, %v525_v10, 0.0  ;;  %v526_v19 = vmul.f32 %v1556_v14, %v1556_v14 }
   0x6   :  { %1223 = vmatprep.subr.msk.bf16.mxu0 %vm1518_vm1, %v1221_v8  ;;  %1264 = vmatprep.subr.msk.bf16.mxu1 %vm1518_vm1, %v1221_v8 }
   0x7   :  { %545 = vadd.xlane.f32.xlu1 %v544_v9  ;;  %539 = vadd.xlane.f32.xlu0 %v538_v11 }
   0x8   :  { %13 = vsyncpa [#allocation5], 0  ;;  %v1227_v20 = vpack.c.bf16 %v1561_v15, %v1556_v14  ;;  %v1575_v21 = vld [vmem:[%s2402_s0 + $0x38] sm:$0xff]  ;;  %v1580_v22 = vld [vmem:[%s2402_s0 + $0x30] sm:$0xff]  ;;  %v553_v23 = vsel %vm328_vm0, %v527_v17, 0.0  ;;  %v550_v25 = vsel %vm328_vm0, %v526_v19, 0.0  ;;  %v530_v31 = vmul.f32 %v312_v13, %v312_v13 }
   0x9   :  { %v529_v24 = vmul.f32 %v1575_v21, %v1575_v21  ;;  %v528_v26 = vmul.f32 %v1580_v22, %v1580_v22  ;;  %v1599_v27 = vld [vmem:[%s2402_s0 + $0x48] sm:$0xff]  ;;  %v1233_v32 = vpack.c.bf16 %v1575_v21, %v1580_v22  ;;  %v315_v33 = vld [vmem:[%s2402_s0 + $0x58] sm:$0xff]  ;;  %v314_v34 = vld [vmem:[%s2402_s0 + $0x50] sm:$0xff]  ;;  %v1460_v10 = vmov 0  }
   0xa   :  { %v531_v29 = vmul.f32 %v1599_v27, %v1599_v27  ;;  %v533_v36 = vmul.f32 %v315_v33, %v315_v33  ;;  %v562_v37 = vsel %vm328_vm0, %v530_v31, 0.0  ;;  %v532_v38 = vmul.f32 %v314_v34, %v314_v34  ;;  %v317_v39 = vld [vmem:[%s2402_s0 + $0x68] sm:$0xff]  ;;  %v316_v40 = vld [vmem:[%s2402_s0 + $0x60] sm:$0xff]  ;;  %v319_v46 = vld [vmem:[%s2402_s0 + $0x78] sm:$0xff]  ;;  %1291 = vset.pattern.permute.xlu1 %v1460_v10  ;;  %1290 = vset.pattern.permute.xlu0 %v1460_v10 }
   0xb   :  { %548 = vadd.xlane.f32.xlu1 %v547_v16  ;;  %542 = vadd.xlane.f32.xlu0 %v541_v18  ;;  %v559_v28 = vsel %vm328_vm0, %v529_v24, 0.0  ;;  %v556_v30 = vsel %vm328_vm0, %v528_v26, 0.0  ;;  %v535_v42 = vmul.f32 %v317_v39, %v317_v39  ;;  %v534_v44 = vmul.f32 %v316_v40, %v316_v40  ;;  %v318_v47 = vld [vmem:[%s2402_s0 + $0x70] sm:$0xff]  ;;  %v320_v57 = vld [vmem:[%s2403_s1] sm:$0xff]  ;;  %v321_v58 = vld [vmem:[%s2403_s1 + $0x8] sm:$0xff] }
   0xc   :  { %v565_v35 = vsel %vm328_vm0, %v531_v29, 0.0  ;;  %v571_v41 = vsel %vm328_vm0, %v533_v36, 0.0  ;;  %v568_v43 = vsel %vm328_vm0, %v532_v38, 0.0  ;;  %v1239_v45 = vpack.c.bf16 %v1599_v27, %v312_v13  ;;  %v322_v61 = vld [vmem:[%s2403_s1 + $0x10] sm:$0xff]  ;;  %v323_v0 = vld [vmem:[%s2403_s1 + $0x18] sm:$0xff]  ;;  %v324_v3 = vld [vmem:[%s2403_s1 + $0x20] sm:$0xff] }
   0xd   :  { %1226 = vmatpush3.bf16.xpose.msk.msra.mxu0 %vm1518_vm1, %v1221_v8  ;;  %1272 = vmatpush3.bf16.xpose.msk.msra.mxu1 %vm1518_vm1, %v1221_v8  ;;  %v577_v48 = vsel %vm328_vm0, %v535_v42, 0.0  ;;  %v537_v49 = vmul.f32 %v319_v46, %v319_v46  ;;  %v574_v50 = vsel %vm328_vm0, %v534_v44, 0.0  ;;  %v536_v51 = vmul.f32 %v318_v47, %v318_v47  ;;  %v325_v6 = vld [vmem:[%s2403_s1 + $0x28] sm:$0xff]  ;;  %v326_v9 = vld [vmem:[%s2403_s1 + $0x30] sm:$0xff] }
   0xe   :  { %1229 = vmatprep.subr.msk.bf16.mxu0 %vm1518_vm1, %v1227_v20  ;;  %1265 = vmatprep.subr.msk.bf16.mxu1 %vm1518_vm1, %v1227_v20  ;;  %v1245_v54 = vpack.c.bf16 %v315_v33, %v314_v34  ;;  %v1251_v55 = vpack.c.bf16 %v317_v39, %v316_v40  ;;  %v1257_v56 = vpack.c.bf16 %v319_v46, %v318_v47  ;;  %v607_v31 = vlaneseq }
   0xf   :  { %554 = vadd.xlane.f32.xlu1 %v553_v23  ;;  %551 = vadd.xlane.f32.xlu0 %v550_v25  ;;  %v583_v52 = vsel %vm328_vm0, %v537_v49, 0.0  ;;  %v580_v53 = vsel %vm328_vm0, %v536_v51, 0.0  ;;  %v586_v59 = vmul.f32 %v320_v57, %v320_v57  ;;  %v587_v60 = vmul.f32 %v321_v58, %v321_v58 }
  0x10   :  { %v588_v62 = vmul.f32 %v322_v61, %v322_v61  ;;  %v590_v4 = vmul.f32 %v324_v3, %v324_v3  ;;  %v591_v7 = vmul.f32 %v325_v6, %v325_v6  ;;  %v592_v13 = vmul.f32 %v326_v9, %v326_v9 }
  0x11   :  { %v594_v63 = vadd.f32 %v587_v60, %v586_v59  ;;  %v1729_v38 = vand.u32 127, %v607_v31 }
  0x13   :  { %560 = vadd.xlane.f32.xlu1 %v559_v28  ;;  %557 = vadd.xlane.f32.xlu0 %v556_v30 }
  0x15   :  { %1232 = vmatpush3.bf16.xpose.msk.msra.mxu0 %vm1518_vm1, %v1227_v20  ;;  %1273 = vmatpush3.bf16.xpose.msk.msra.mxu1 %vm1518_vm1, %v1227_v20 }
  0x16   :  { %1235 = vmatprep.subr.msk.bf16.mxu0 %vm1518_vm1, %v1233_v32  ;;  %1266 = vmatprep.subr.msk.bf16.mxu1 %vm1518_vm1, %v1233_v32 }
  0x17   :  { %566 = vadd.xlane.f32.xlu1 %v565_v35  ;;  %563 = vadd.xlane.f32.xlu0 %v562_v37  ;;  %v1724_v35 = vshrl.u32 %v607_v31, 7 }
  0x19   :  { %v1727_v37 = vadd.s32 8, %v1724_v35  ;;  %vm2416_vm3 = vcmp.eq.s32.totalorder %v1724_v35, %v1729_v38  ;;  %v1758_v61 = vadd.s32 16, %v1724_v35  ;;  %v1770_v3 = vadd.s32 32, %v1724_v35 }
  0x1a   :  { %v1777_v9 = vadd.s32 56, %v1724_v35 }
  0x1b   :  { %572 = vadd.xlane.f32.xlu1 %v571_v41  ;;  %569 = vadd.xlane.f32.xlu0 %v568_v43  ;;  %v1734_v43 = vadd.s32 72, %v1724_v35  ;;  %vm627_vm2 = vcmp.eq.s32.totalorder %v1727_v37, %v1729_v38  ;;  %vm2413_vm6 = vcmp.eq.s32.totalorder %v1758_v61, %v1729_v38  ;;  %vm2410_vm8 = vcmp.eq.s32.totalorder %v1770_v3, %v1729_v38 }
  0x1c   :  { %vm2412_vm9 = vcmp.eq.s32.totalorder %v1777_v9, %v1729_v38 }
  0x1d   :  { %1238 = vmatpush3.bf16.xpose.msk.msra.mxu0 %vm1518_vm1, %v1233_v32  ;;  %1274 = vmatpush3.bf16.xpose.msk.msra.mxu1 %vm1518_vm1, %v1233_v32  ;;  %vm2409_vm4 = vcmp.eq.s32.totalorder %v1734_v43, %v1729_v38 }
  0x1e   :  { %1241 = vmatprep.subr.msk.bf16.mxu0 %vm1518_vm1, %v1239_v45  ;;  %1267 = vmatprep.subr.msk.bf16.mxu1 %vm1518_vm1, %v1239_v45 }
  0x1f   :  { %578 = vadd.xlane.f32.xlu1 %v577_v48  ;;  %575 = vadd.xlane.f32.xlu0 %v574_v50 }
  0x23   :  { %584 = vadd.xlane.f32.xlu1 %v583_v52  ;;  %581 = vadd.xlane.f32.xlu0 %v580_v53 }
  0x25   :  { %1244 = vmatpush3.bf16.xpose.msk.msra.mxu0 %vm1518_vm1, %v1239_v45  ;;  %1275 = vmatpush3.bf16.xpose.msk.msra.mxu1 %vm1518_vm1, %v1239_v45 }
  0x26   :  { %1247 = vmatprep.subr.msk.bf16.mxu0 %vm1518_vm1, %v1245_v54  ;;  %1268 = vmatprep.subr.msk.bf16.mxu1 %vm1518_vm1, %v1245_v54 }
  0x2d   :  { %1250 = vmatpush3.bf16.xpose.msk.msra.mxu0 %vm1518_vm1, %v1245_v54  ;;  %1276 = vmatpush3.bf16.xpose.msk.msra.mxu1 %vm1518_vm1, %v1245_v54 }
  0x2e   :  { %1253 = vmatprep.subr.msk.bf16.mxu0 %vm1518_vm1, %v1251_v55  ;;  %1269 = vmatprep.subr.msk.bf16.mxu1 %vm1518_vm1, %v1251_v55 }
  0x35   :  { %1256 = vmatpush3.bf16.xpose.msk.msra.mxu0 %vm1518_vm1, %v1251_v55  ;;  %1277 = vmatpush3.bf16.xpose.msk.msra.mxu1 %vm1518_vm1, %v1251_v55 }
  0x36   :  { %1259 = vmatprep.subr.msk.bf16.mxu0 %vm1518_vm1, %v1257_v56  ;;  %1270 = vmatprep.subr.msk.bf16.mxu1 %vm1518_vm1, %v1257_v56 }
  0x3d   :  { %1262 = vmatpush3.bf16.xpose.msk.msra.mxu0 %vm1518_vm1, %v1257_v56  ;;  %1278 = vmatpush3.bf16.xpose.msk.msra.mxu1 %vm1518_vm1, %v1257_v56 }
  0x44   :  { %1192 = vmatmul.mubr.msk.f32.vlgmr.msra.gmra.mrb[0].mxu0 %vm328_vm0, %v1508_v1  ;;  %1204 = vmatmul.mubr.msk.f32.vlgmr.msra.gmra.mrb[0].mxu1 %vm328_vm0, %v1599_v27  ;;  %v589_v1 = vmul.f32 %v323_v0, %v323_v0 }
  0x45   :  { %1194 = vmatprep.mubr.msk.f32.mxu0 %vm328_vm0, %v1513_v2  ;;  %1206 = vmatprep.mubr.msk.f32.mxu1 %vm328_vm0, %v314_v34  ;;  %v595_v2 = vadd.f32 %v594_v63, %v588_v62 }
  0x48   :  { %1195 = vmatmul.mubr.msk.f32.gmra.mrb[2].mxu0 %vm328_vm0, %v1525_v5  ;;  %1207 = vmatmul.mubr.msk.f32.gmra.mrb[2].mxu1 %vm328_vm0, %v315_v33  ;;  %v596_v5 = vadd.f32 %v595_v2, %v589_v1  ;;  %v1767_v2 = vadd.s32 40, %v1724_v35 }
  0x49   :  { %1197 = vmatprep.mubr.msk.f32.mxu0 %vm328_vm0, %v1556_v14  ;;  %1209 = vmatprep.mubr.msk.f32.mxu1 %vm328_vm0, %v316_v40 }
  0x4a   :  { %v597_v8 = vadd.f32 %v596_v5, %v590_v4  ;;  %vm2411_vm7 = vcmp.eq.s32.totalorder %v1767_v2, %v1729_v38 }
  0x4c   :  { %1198 = vmatmul.mubr.msk.f32.gmra.mrb[4].mxu0 %vm328_vm0, %v1561_v15  ;;  %1210 = vmatmul.mubr.msk.f32.gmra.mrb[4].mxu1 %vm328_vm0, %v317_v39  ;;  %v598_v14 = vadd.f32 %v597_v8, %v591_v7  ;;  %v327_v15 = vld [vmem:[%s2403_s1 + $0x38] sm:$0xff] }
  0x4d   :  { %1200 = vmatprep.mubr.msk.f32.mxu0 %vm328_vm0, %v1580_v22  ;;  %1212 = vmatprep.mubr.msk.f32.mxu1 %vm328_vm0, %v318_v47  ;;  %v593_v16 = vmul.f32 %v327_v15, %v327_v15  ;;  %v1741_v47 = vadd.s32 24, %v1724_v35 }
  0x4e   :  { %v599_v17 = vadd.f32 %v598_v14, %v592_v13 }
  0x4f   :  { %vm2414_vm5 = vcmp.eq.s32.totalorder %v1741_v47, %v1729_v38 }
  0x50   :  { %1201 = vmatmul.mubr.msk.f32.gmra.mrb[6].mxu0 %vm328_vm0, %v1575_v21  ;;  %1213 = vmatmul.mubr.msk.f32.gmra.mrb[6].mxu1 %vm328_vm0, %v319_v46  ;;  %v600_v20 = vadd.f32 %v599_v17, %v593_v16 }
  0x52   :  { %v601_v23 = vrot.slane %v600_v20, 4 }
  0x54   :  { %v602_v24 = vadd.f32 %v601_v23, %v600_v20  ;;  %v1796_v23 = vadd.s32 88, %v1724_v35 }
  0x56   :  { %v603_v27 = vrot.slane %v602_v24, 2  ;;  %vm2417_vm13 = vcmp.eq.s32.totalorder %v1796_v23, %v1729_v38 }
  0x58   :  { %v604_v30 = vadd.f32 %v603_v27, %v602_v24 }
  0x5a   :  { %v605_v32 = vrot.slane %v604_v30, 1 }
  0x5c   :  { %v606_v36 = vadd.f32 %v605_v32, %v604_v30 }
  0x94   :  { %v546_v11 = vpop.xlane.xlu1 %545  ;;  %v540_v12 = vpop.xlane.xlu0 %539 }
  0x95   :  { %v1731_v41 = vadd.f32 %v606_v36, %v546_v11  ;;  %v642_v42 = vadd.f32 %v606_v36, %v540_v12 }
  0x98   :  { %v549_v18 = vpop.xlane.xlu1 %548  ;;  %v543_v19 = vpop.xlane.xlu0 %542 }
  0x99   :  { %v1736_v44 = vadd.f32 %v606_v36, %v549_v18  ;;  %v643_v45 = vadd.f32 %v606_v36, %v543_v19  ;;  %v1782_v18 = vadd.s32 48, %v1724_v35  ;;  %v1785_v19 = vadd.s32 64, %v1724_v35 }
  0x9b   :  { %vm2415_vm10 = vcmp.eq.s32.totalorder %v1782_v18, %v1729_v38  ;;  %vm2418_vm12 = vcmp.eq.s32.totalorder %v1785_v19, %v1729_v38 }
  0x9c   :  { %v555_v21 = vpop.xlane.xlu1 %554  ;;  %v552_v22 = vpop.xlane.xlu0 %551 }
  0x9d   :  { %v1738_v46 = vadd.f32 %v606_v36, %v555_v21  ;;  %v1743_v48 = vadd.f32 %v606_v36, %v552_v22 }
  0xa0   :  { %v561_v25 = vpop.xlane.xlu1 %560  ;;  %v558_v26 = vpop.xlane.xlu0 %557 }
  0xa1   :  { %v1745_v49 = vadd.f32 %v606_v36, %v561_v25  ;;  %v1747_v50 = vadd.f32 %v606_v36, %v558_v26 }
  0xa4   :  { %v567_v28 = vpop.xlane.xlu1 %566  ;;  %v564_v29 = vpop.xlane.xlu0 %563 }
  0xa5   :  { %v651_v56 = vadd.f32 %v606_v36, %v567_v28  ;;  %v1751_v57 = vadd.f32 %v606_v36, %v564_v29  ;;  %v1806_v28 = vadd.s32 80, %v1724_v35 }
  0xa7   :  { %vm636_vm1 = vcmp.eq.s32.totalorder %v1806_v28, %v1729_v38 }
  0xa8   :  { %v573_v33 = vpop.xlane.xlu1 %572  ;;  %v570_v34 = vpop.xlane.xlu0 %569 }
  0xa9   :  { %v1755_v60 = vadd.f32 %v606_v36, %v573_v33  ;;  %v1762_v63 = vadd.f32 %v606_v36, %v570_v34 }
  0xac   :  { %v579_v39 = vpop.xlane.xlu1 %578  ;;  %v576_v40 = vpop.xlane.xlu0 %575 }
  0xad   :  { %v1772_v7 = vadd.f32 %v606_v36, %v579_v39  ;;  %v1774_v8 = vadd.f32 %v606_v36, %v576_v40 }
  0xb0   :  { %v585_v0 = vpop.xlane.xlu1 %584  ;;  %v582_v1 = vpop.xlane.xlu0 %581 }
  0xb1   :  { %v1779_v17 = vadd.f32 %v606_v36, %v585_v0  ;;  %v1788_v21 = vadd.f32 %v606_v36, %v582_v1 }
 0x117   :  { %v1193_v51 = vpop.f32.mrb[0].mxu0  ;;  %v1205_v52 = vpop.f32.mrb[0].mxu1 }
 0x118   :  { %v659_v53 = vmul.f32 2.0, %v1193_v51  ;;  %v443_v54 = vpop.f32.mrb[1].mxu0  ;;  %v667_v55 = vmul.f32 2.0, %v1205_v52  ;;  %v483_v58 = vpop.f32.mrb[1].mxu1  ;;  %v1815_v51 = vadd.s32 96, %v1724_v35  ;;  %v1818_v52 = vadd.s32 120, %v1724_v35 }
 0x119   :  { %v658_v59 = vmul.f32 2.0, %v443_v54  ;;  %v666_v12 = vmul.f32 2.0, %v483_v58 }
 0x11a   :  { %v675_v62 = vsub.f32 %v643_v45, %v659_v53  ;;  %v683_v11 = vsub.f32 %v651_v56, %v667_v55  ;;  %v1812_v45 = vadd.s32 104, %v1724_v35 }
 0x11b   :  { %v674_v4 = vsub.f32 %v642_v42, %v658_v59  ;;  %v1196_v5 = vpop.f32.mrb[2].mxu0  ;;  %v1208_v6 = vpop.f32.mrb[2].mxu1  ;;  %v682_v30 = vsub.f32 %v1751_v57, %v666_v12 }
 0x11c   :  { %v691_v10 = vmax.f32 %v675_v62, 0.0  ;;  %v661_v13 = vmul.f32 2.0, %v1196_v5  ;;  %v453_v14 = vpop.f32.mrb[3].mxu0  ;;  %v493_v15 = vpop.f32.mrb[3].mxu1  ;;  %v669_v25 = vmul.f32 2.0, %v1208_v6  ;;  %v699_v29 = vmax.f32 %v683_v11, 0.0 }
 0x11d   :  { %v660_v16 = vmul.f32 2.0, %v453_v14  ;;  %v690_v24 = vmax.f32 %v674_v4, 0.0  ;;  %v668_v31 = vmul.f32 2.0, %v493_v15  ;;  %v1829_v57 = vmax.f32 %v682_v30, 0.0 }
 0x11e   :  { %v677_v20 = vsub.f32 %v1736_v44, %v661_v13  ;;  %v1793_v22 = vsel %vm627_vm2, 0.0, %v691_v10  ;;  %v685_v53 = vsub.f32 %v1755_v60, %v669_v25 }
 0x11f   :  { %v1199_v26 = vpop.f32.mrb[4].mxu0  ;;  %v1211_v27 = vpop.f32.mrb[4].mxu1  ;;  %1294 = vrsqrt.f32 %v1793_v22  ;;  %v676_v39 = vsub.f32 %v1731_v41, %v660_v16  ;;  %v684_v58 = vsub.f32 %v1762_v63, %v668_v31  ;;  %vm731_vm11 = vcmp.eq.f32.partialorder %v1793_v22, inf }
 0x120   :  { %v663_v32 = vmul.f32 2.0, %v1199_v26  ;;  %v463_v33 = vpop.f32.mrb[5].mxu0  ;;  %v503_v34 = vpop.f32.mrb[5].mxu1  ;;  %v693_v36 = vmax.f32 %v677_v20, 0.0  ;;  %v671_v42 = vmul.f32 2.0, %v1211_v27  ;;  %v701_v11 = vmax.f32 %v685_v53, 0.0 }
 0x121   :  { %v662_v40 = vmul.f32 2.0, %v463_v33  ;;  %v670_v55 = vmul.f32 2.0, %v503_v34  ;;  %v692_v0 = vmax.f32 %v676_v39, 0.0  ;;  %vm733_vm14 = vcmp.eq.f32.partialorder %v1793_v22, 0.0 }
 0x122   :  { %v679_v44 = vsub.f32 %v1738_v46, %v663_v32  ;;  %v1825_v46 = vsel %vm2416_vm3, 0.0, %v690_v24  ;;  %v687_v1 = vsub.f32 %v1772_v7, %v671_v42  ;;  %v1841_v5 = vsel %vm2414_vm5, 0.0, %v693_v36 }
 0x123   :  { %v678_v54 = vsub.f32 %v1743_v48, %v662_v40  ;;  %v1202_v56 = vpop.f32.mrb[6].mxu0  ;;  %v1214_v41 = vpop.f32.mrb[6].mxu1  ;;  %v1835_v48 = vsel %vm2409_vm4, 0.0, %v699_v29  ;;  %1296 = vrsqrt.f32 %v1825_v46  ;;  %v686_v12 = vsub.f32 %v1774_v8, %v670_v55 }
 0x124   :  { %v665_v59 = vmul.f32 2.0, %v1202_v56  ;;  %v473_v62 = vpop.f32.mrb[7].mxu0  ;;  %v513_v60 = vpop.f32.mrb[7].mxu1  ;;  %v695_v63 = vmax.f32 %v679_v44, 0.0  ;;  %v1848_v13 = vmul.f32 2.0, %v1214_v41  ;;  %v1851_v7 = vmax.f32 %v684_v58, 0.0 }
 0x125   :  { %v664_v4 = vmul.f32 2.0, %v473_v62  ;;  %v694_v6 = vmax.f32 %v678_v54, 0.0  ;;  %v1854_v15 = vmul.f32 2.0, %v513_v60  ;;  %1298 = vrsqrt.f32 %v1841_v5 }
 0x126   :  { %v681_v10 = vsub.f32 %v1745_v49, %v665_v59  ;;  %v1861_v8 = vmax.f32 %v687_v1, 0.0  ;;  %v734_v20 = vand.u32 2147483648, %v1793_v22  ;;  %v1869_v24 = vsel %vm2413_vm6, 0.0, %v692_v0 }
 0x127   :  { %v680_v14 = vsub.f32 %v1747_v50, %v664_v4  ;;  %v1874_v25 = vsel %vm2411_vm7, 0.0, %v695_v63  ;;  %v1879_v26 = vsel %vm2410_vm8, 0.0, %v694_v6  ;;  %v1881_v27 = vmax.f32 %v686_v12, 0.0 }
 0x128   :  { %v697_v16 = vmax.f32 %v681_v10, 0.0  ;;  %v689_v29 = vsub.f32 %v1779_v17, %v1848_v13  ;;  %vm724_vm15 = vcmp.eq.f32.partialorder %v1825_v46, inf  ;;  %1300 = vrsqrt.f32 %v1869_v24 }
 0x129   :  { %v1295_v49 = vpop.eup %1294  ;;  %v696_v30 = vmax.f32 %v680_v14, 0.0  ;;  %v688_v31 = vsub.f32 %v1788_v21, %v1854_v15  ;;  %1302 = vrsqrt.f32 %v1874_v25  ;;  %vm726_vm0 = vcmp.eq.f32.partialorder %v1825_v46, 0.0 }
 0x12a   :  { %v730_v50 = vmul.f32 %v1295_v49, %v1793_v22  ;;  %v727_v34 = vand.u32 2147483648, %v1825_v46  ;;  %1304 = vrsqrt.f32 %v1879_v26  ;;  %vm745_vm4 = vcmp.eq.f32.partialorder %v1841_v5, inf }
 0x12b   :  { %vm747_vm8 = vcmp.eq.f32.partialorder %v1841_v5, 0.0  ;;  %v748_v39 = vand.u32 2147483648, %v1841_v5  ;;  %v741_v40 = vand.u32 2147483648, %v1869_v24  ;;  %vm759_vm7 = vcmp.eq.f32.partialorder %v1874_v25, inf }
 0x12c   :  { %v732_v32 = vsel %vm731_vm11, %v1793_v22, %v730_v50  ;;  %v1903_v22 = vsel %vm2412_vm9, 0.0, %v697_v16  ;;  %vm738_vm11 = vcmp.eq.f32.partialorder %v1869_v24, inf  ;;  %v1914_v53 = vsel %vm2415_vm10, 0.0, %v696_v30 }
 0x12d   :  { %v735_v33 = vsel %vm733_vm14, %v734_v20, %v732_v32  ;;  %1306 = vrsqrt.f32 %v1903_v22  ;;  %v1297_v42 = vpop.eup %1296  ;;  %vm740_vm14 = vcmp.eq.f32.partialorder %v1869_v24, 0.0  ;;  %vm761_vm9 = vcmp.eq.f32.partialorder %v1874_v25, 0.0 }
 0x12e   :  { %v835_v36 = vmul.f32 -0.5, %v735_v33  ;;  %1308 = vrsqrt.f32 %v1835_v48  ;;  %v723_v54 = vmul.f32 %v1297_v42, %v1825_v46  ;;  %v762_v55 = vand.u32 2147483648, %v1874_v25 }
 0x12f   :  { %vm752_vm6 = vcmp.eq.f32.partialorder %v1879_v26, inf  ;;  %1310 = vrsqrt.f32 %v1914_v53  ;;  %v1299_v56 = vpop.eup %1298  ;;  %vm754_vm5 = vcmp.eq.f32.partialorder %v1879_v26, 0.0  ;;  %v755_v41 = vand.u32 2147483648, %v1879_v26 }
 0x130   :  { %v852_v44 = vmul.f32 1.442695, %v835_v36  ;;  %v776_v58 = vand.u32 2147483648, %v1903_v22  ;;  %v725_v59 = vsel %vm724_vm15, %v1825_v46, %v723_v54  ;;  %v744_v62 = vmul.f32 %v1299_v56, %v1841_v5 }
 0x131   :  { %vm773_vm10 = vcmp.eq.f32.partialorder %v1903_v22, inf  ;;  %v1934_v60 = vsel %vm2418_vm12, 0.0, %v1829_v57  ;;  %v1939_v0 = vsel %vm2417_vm13, 0.0, %v701_v11  ;;  %v728_v1 = vsel %vm726_vm0, %v727_v34, %v725_v59 }
 0x132   :  { %1312 = vpow2.f32 %v852_v44  ;;  %vm775_vm15 = vcmp.eq.f32.partialorder %v1903_v22, 0.0  ;;  %v769_v4 = vand.u32 2147483648, %v1914_v53  ;;  %vm787_vm3 = vcmp.eq.f32.partialorder %v1835_v48, inf  ;;  %v1301_v63 = vpop.eup %1300 }
 0x133   :  { %1314 = vrsqrt.f32 %v1934_v60  ;;  %v834_v6 = vmul.f32 -0.5, %v728_v1  ;;  %v746_v57 = vsel %vm745_vm4, %v1841_v5, %v744_v62  ;;  %v790_v10 = vand.u32 2147483648, %v1835_v48  ;;  %v1303_v46 = vpop.eup %1302 }
 0x134   :  { %1316 = vrsqrt.f32 %v1939_v0  ;;  %v749_v11 = vsel %vm747_vm8, %v748_v39, %v746_v57  ;;  %v737_v12 = vmul.f32 %v1301_v63, %v1869_v24  ;;  %vm766_vm0 = vcmp.eq.f32.partialorder %v1914_v53, inf  ;;  %v1305_v49 = vpop.eup %1304 }
 0x135   :  { %vm789_vm13 = vcmp.eq.f32.partialorder %v1835_v48, 0.0  ;;  %v783_v14 = vand.u32 2147483648, %v1934_v60  ;;  %v850_v16 = vmul.f32 1.442695, %v834_v6  ;;  %v914_v20 = vadd.f32 %v835_v36, %v834_v6 }
 0x136   :  { %v837_v50 = vmul.f32 -0.5, %v749_v11  ;;  %v758_v30 = vmul.f32 %v1303_v46, %v1874_v25  ;;  %vm768_vm4 = vcmp.eq.f32.partialorder %v1914_v53, 0.0  ;;  %vm782_vm8 = vcmp.eq.f32.partialorder %v1934_v60, 0.0 }
 0x137   :  { %v739_v5 = vsel %vm738_vm11, %v1869_v24, %v737_v12  ;;  %v751_v32 = vmul.f32 %v1305_v49, %v1879_v26  ;;  %vm801_vm12 = vcmp.eq.f32.partialorder %v1939_v0, inf  ;;  %v804_v33 = vand.u32 2147483648, %v1939_v0  ;;  %v1307_v36 = vpop.eup %1306 }
 0x138   :  { %v1972_v34 = vsel %vm636_vm1, 0.0, %v1851_v7  ;;  %1318 = vpow2.f32 %v850_v16  ;;  %v856_v39 = vmul.f32 1.442695, %v837_v50  ;;  %v742_v42 = vsel %vm740_vm14, %v741_v40, %v739_v5  ;;  %v1309_v54 = vpop.eup %1308 }
 0x139   :  { %v760_v44 = vsel %vm759_vm7, %v1874_v25, %v758_v30  ;;  %vm803_vm11 = vcmp.eq.f32.partialorder %v1939_v0, 0.0  ;;  %v836_v56 = vmul.f32 -0.5, %v742_v42  ;;  %v753_v7 = vsel %vm752_vm6, %v1879_v26, %v751_v32  ;;  %v1311_v1 = vpop.eup %1310 }
 0x13a   :  { %v763_v59 = vsel %vm761_vm9, %v762_v55, %v760_v44  ;;  %v772_v62 = vmul.f32 %v1307_v36, %v1903_v22  ;;  %1320 = vpow2.f32 %v856_v39  ;;  %v756_v40 = vsel %vm754_vm5, %v755_v41, %v753_v7 }
 0x13b   :  { %v839_v24 = vmul.f32 -0.5, %v763_v59  ;;  %v786_v63 = vmul.f32 %v1309_v54, %v1835_v48  ;;  %v854_v57 = vmul.f32 1.442695, %v836_v56  ;;  %v915_v46 = vadd.f32 %v914_v20, %v836_v56 }
 0x13c   :  { %v1313_v6 = vpop.eup %1312  ;;  %v838_v11 = vmul.f32 -0.5, %v756_v40  ;;  %v774_v25 = vsel %vm773_vm10, %v1903_v22, %v772_v62  ;;  %vm639_vm6 = vcmp.eq.s32.totalorder %v1812_v45, %v1729_v38  ;;  %vm638_vm7 = vcmp.eq.s32.totalorder %v1815_v51, %v1729_v38  ;;  %v23_v51 = vld [vmem:[%s2404_s2 + $0x8] sm:$0xff] }
 0x13d   :  { %v883_v26 = vsel %vm627_vm2, 0.0, %v1313_v6  ;;  %v860_v55 = vmul.f32 1.442695, %v839_v24  ;;  %v777_v41 = vsel %vm775_vm15, %v776_v58, %v774_v25  ;;  %v765_v12 = vmul.f32 %v1311_v1, %v1914_v53  ;;  %v1315_v49 = vpop.eup %1314 }
 0x13e   :  { %941 = vadd.xlane.f32.xlu1 %v883_v26  ;;  %899 = vst [vmem:[#allocation4 + $0x8] sm:$0xff] %v883_v26  ;;  %1322 = vpow2.f32 %v854_v57  ;;  %v858_v16 = vmul.f32 1.442695, %v838_v11  ;;  %v916_v20 = vadd.f32 %v915_v46, %v837_v50  ;;  %v2002_v30 = vmul.f32 -0.5, %v777_v41  ;;  %v1317_v5 = vpop.eup %1316 }
 0x13f   :  { %1324 = vpow2.f32 %v860_v55  ;;  %v767_v37 = vsel %vm766_vm0, %v1914_v53, %v765_v12  ;;  %v788_v22 = vsel %vm787_vm3, %v1835_v48, %v786_v63  ;;  %v779_v58 = vmul.f32 %v1315_v49, %v1934_v60 }
 0x140   :  { %1326 = vpow2.f32 %v858_v16  ;;  %v917_v32 = vadd.f32 %v916_v20, %v838_v11  ;;  %v864_v36 = vmul.f32 1.442695, %v2002_v30  ;;  %v770_v50 = vsel %vm768_vm4, %v769_v4, %v767_v37 }
 0x141   :  { %v840_v39 = vmul.f32 -0.5, %v770_v50  ;;  %v791_v42 = vsel %vm789_vm13, %v790_v10, %v788_v22  ;;  %vm2421_vm2 = vcmp.eq.f32.partialorder %v1934_v60, inf  ;;  %v800_v54 = vmul.f32 %v1317_v5, %v1939_v0 }
 0x142   :  { %v781_v44 = vsel %vm2421_vm2, %v1934_v60, %v779_v58  ;;  %1328 = vpow2.f32 %v864_v36  ;;  %v918_v56 = vadd.f32 %v917_v32, %v839_v24  ;;  %v2024_v59 = vmul.f32 -0.5, %v791_v42  ;;  %v1319_v4 = vpop.eup %1318 }
 0x143   :  { %v784_v53 = vsel %vm782_vm8, %v783_v14, %v781_v44  ;;  %v862_v7 = vmul.f32 1.442695, %v840_v39  ;;  %v802_v48 = vsel %vm801_vm12, %v1939_v0, %v800_v54  ;;  %1330 = vrsqrt.f32 %v1972_v34 }
 0x144   :  { %v842_v62 = vmul.f32 -0.5, %v784_v53  ;;  %vm2422_vm3 = vcmp.eq.s32.totalorder %v1724_v35, %v1729_v38  ;;  %v919_v1 = vadd.f32 %v918_v56, %v840_v39  ;;  %v868_v24 = vmul.f32 1.442695, %v2024_v59  ;;  %v1321_v14 = vpop.eup %1320 }
 0x145   :  { %v882_v10 = vsel %vm2422_vm3, 0.0, %v1319_v4  ;;  %v805_v60 = vsel %vm803_vm11, %v804_v33, %v802_v48  ;;  %1332 = vpow2.f32 %v862_v7  ;;  %v2043_v6 = vadd.s32 112, %v1724_v35 }
 0x146   :  { %939 = vadd.xlane.f32.xlu0 %v882_v10  ;;  %898 = vst [vmem:[#allocation4] sm:$0xff] %v882_v10  ;;  %v866_v40 = vmul.f32 1.442695, %v842_v62  ;;  %v2040_v63 = vmul.f32 -0.5, %v805_v60  ;;  %v705_v57 = vmax.f32 %v689_v29, 0.0  ;;  %vm2423_vm5 = vcmp.eq.s32.totalorder %v1741_v47, %v1729_v38 }
 0x147   :  { %v885_v46 = vsel %vm2423_vm5, 0.0, %v1321_v14  ;;  %1334 = vpow2.f32 %v868_v24  ;;  %vm641_vm9 = vcmp.eq.s32.totalorder %v1818_v52, %v1729_v38  ;;  %v2058_v35 = vsel %vm639_vm6, 0.0, %v1861_v8  ;;  %v2176_v52 = vld [vmem:[%s2404_s2] sm:$0xff] }
 0x148   :  { %945 = vadd.xlane.f32.xlu1 %v885_v46  ;;  %901 = vst [vmem:[#allocation4 + $0x18] sm:$0xff] %v885_v46  ;;  %1336 = vpow2.f32 %v866_v40  ;;  %v872_v0 = vmul.f32 1.442695, %v2040_v63  ;;  %v2064_v47 = vsel %vm638_vm7, 0.0, %v1881_v27  ;;  %v1323_v17 = vpop.eup %1322  ;;  %v704_v13 = vmax.f32 %v688_v31, 0.0 }
 0x149   :  { %1338 = vrsqrt.f32 %v2058_v35  ;;  %v1325_v29 = vpop.eup %1324  ;;  %vm2424_vm10 = vcmp.eq.s32.totalorder %v1758_v61, %v1729_v38  ;;  %vm640_vm12 = vcmp.eq.s32.totalorder %v2043_v6, %v1729_v38  ;;  %vm2425_vm13 = vcmp.eq.s32.totalorder %v1767_v2, %v1729_v38  ;;  %v2188_v6 = vld [vmem:[%s2404_s2 + $0x38] sm:$0xff] }
 0x14a   :  { %v884_v33 = vsel %vm2424_vm10, 0.0, %v1323_v17  ;;  %1340 = vpow2.f32 %v872_v0  ;;  %v1327_v8 = vpop.eup %1326  ;;  %v887_v27 = vsel %vm2425_vm13, 0.0, %v1325_v29  ;;  %v2082_v21 = vsel %vm641_vm9, 0.0, %v705_v57 }
 0x14b   :  { %943 = vadd.xlane.f32.xlu0 %v884_v33  ;;  %900 = vst [vmem:[#allocation4 + $0x10] sm:$0xff] %v884_v33  ;;  %1342 = vrsqrt.f32 %v2064_v47  ;;  %903 = vst [vmem:[#allocation4 + $0x28] sm:$0xff] %v887_v27  ;;  %vm2426_vm14 = vcmp.eq.s32.totalorder %v1770_v3, %v1729_v38  ;;  %v2091_v2 = vsel %vm640_vm12, 0.0, %v704_v13  ;;  %v920_v31 = vadd.f32 %v919_v1, %v2002_v30 }
 0x14c   :  { %949 = vadd.xlane.f32.xlu1 %v887_v27  ;;  %v886_v61 = vsel %vm2426_vm14, 0.0, %v1327_v8  ;;  %1344 = vrsqrt.f32 %v2082_v21  ;;  %v1329_v15 = vpop.eup %1328  ;;  %vm2427_vm15 = vcmp.eq.s32.totalorder %v1777_v9, %v1729_v38  ;;  %vm794_vm0 = vcmp.eq.f32.partialorder %v1972_v34, inf }
 0x14d   :  { %902 = vst [vmem:[#allocation4 + $0x20] sm:$0xff] %v886_v61  ;;  %v1331_v11 = vpop.eup %1330  ;;  %v889_v25 = vsel %vm2427_vm15, 0.0, %v1329_v15  ;;  %v797_v3 = vand.u32 2147483648, %v1972_v34  ;;  %1346 = vrsqrt.f32 %v2091_v2  ;;  %vm796_vm4 = vcmp.eq.f32.partialorder %v1972_v34, 0.0 }
 0x14e   :  { %905 = vst [vmem:[#allocation4 + $0x38] sm:$0xff] %v889_v25  ;;  %v793_v26 = vmul.f32 %v1331_v11, %v1972_v34  ;;  %v921_v55 = vadd.f32 %v920_v31, %v842_v62  ;;  %vm2428_vm8 = vcmp.eq.s32.totalorder %v1782_v18, %v1729_v38  ;;  %vm2429_vm11 = vcmp.eq.s32.totalorder %v1734_v43, %v1729_v38 }
 0x14f   :  { %947 = vadd.xlane.f32.xlu0 %v886_v61  ;;  %v1333_v41 = vpop.eup %1332  ;;  %vm815_vm2 = vcmp.eq.f32.partialorder %v2058_v35, inf  ;;  %vm2430_vm3 = vcmp.eq.s32.totalorder %v1785_v19, %v1729_v38  ;;  %vm817_vm5 = vcmp.eq.f32.partialorder %v2058_v35, 0.0  ;;  %vm808_vm10 = vcmp.eq.f32.partialorder %v2064_v47, inf }
 0x150   :  { %953 = vadd.xlane.f32.xlu1 %v889_v25  ;;  %v888_v9 = vsel %vm2428_vm8, 0.0, %v1333_v41  ;;  %v795_v49 = vsel %vm794_vm0, %v1972_v34, %v793_v26  ;;  %v922_v16 = vadd.f32 %v921_v55, %v2024_v59  ;;  %v818_v34 = vand.u32 2147483648, %v2058_v35  ;;  %v26_v26 = vld [vmem:[%s2404_s2 + $0x20] sm:$0xff]  ;;  %v2197_v55 = vld [vmem:[%s2404_s2 + $0x48] sm:$0xff] }
 0x151   :  { %v1335_v12 = vpop.eup %1334  ;;  %904 = vst [vmem:[#allocation4 + $0x30] sm:$0xff] %v888_v9  ;;  %v798_v5 = vsel %vm796_vm4, %v797_v3, %v795_v49  ;;  %vm810_vm13 = vcmp.eq.f32.partialorder %v2064_v47, 0.0  ;;  %v811_v32 = vand.u32 2147483648, %v2064_v47  ;;  %vm2431_vm14 = vcmp.eq.s32.totalorder %v1796_v23, %v1729_v38  ;;  %v2170_v3 = vld [vmem:[%s2404_s2 + $0x10] sm:$0xff]  ;;  %v2181_v38 = vld [vmem:[%s2404_s2 + $0x18] sm:$0xff]  ;;  %v2202_v41 = vld [vmem:[%s2404_s2 + $0x28] sm:$0xff] }
 0x152   :  { %v1337_v20 = vpop.eup %1336  ;;  %v891_v30 = vsel %vm2429_vm11, 0.0, %v1335_v12  ;;  %v844_v22 = vmul.f32 -0.5, %v798_v5  ;;  %vm829_vm15 = vcmp.eq.f32.partialorder %v2082_v21, inf  ;;  %vm831_vm0 = vcmp.eq.f32.partialorder %v2082_v21, 0.0  ;;  %v2209_v12 = vld [vmem:[%s2404_s2 + $0x58] sm:$0xff]  ;;  %v2218_v49 = vld [vmem:[%s2404_s2 + $0x68] sm:$0xff] }
 0x153   :  { %v1339_v37 = vpop.eup %1338  ;;  %951 = vadd.xlane.f32.xlu0 %v888_v9  ;;  %907 = vst [vmem:[#allocation4 + $0x48] sm:$0xff] %v891_v30  ;;  %v890_v18 = vsel %vm2430_vm3, 0.0, %v1337_v20  ;;  %v832_v56 = vand.u32 2147483648, %v2082_v21  ;;  %vm822_vm4 = vcmp.eq.f32.partialorder %v2091_v2, inf  ;;  %v825_v48 = vand.u32 2147483648, %v2091_v2  ;;  %v28_v9 = vld [vmem:[%s2404_s2 + $0x30] sm:$0xff] }
 0x154   :  { %v1341_v58 = vpop.eup %1340  ;;  %957 = vadd.xlane.f32.xlu1 %v891_v30  ;;  %906 = vst [vmem:[#allocation4 + $0x40] sm:$0xff] %v890_v18  ;;  %v814_v43 = vmul.f32 %v1339_v37, %v2058_v35  ;;  %v870_v50 = vmul.f32 1.442695, %v844_v22  ;;  %v923_v39 = vadd.f32 %v922_v16, %v844_v22  ;;  %vm824_vm8 = vcmp.eq.f32.partialorder %v2091_v2, 0.0  ;;  %v30_v16 = vld [vmem:[%s2404_s2 + $0x40] sm:$0xff]  ;;  %v2227_v20 = vld [vmem:[%s2404_s2 + $0x78] sm:$0xff] }
 0x155   :  { %v1343_v36 = vpop.eup %1342  ;;  %v893_v19 = vsel %vm2431_vm14, 0.0, %v1341_v58  ;;  %v32_v30 = vld [vmem:[%s2404_s2 + $0x50] sm:$0xff]  ;;  %v34_v5 = vld [vmem:[%s2404_s2 + $0x60] sm:$0xff]  ;;  %v1461_v37 = vmov 1  }
 0x156   :  { %v1345_v42 = vpop.eup %1344  ;;  %909 = vst [vmem:[#allocation4 + $0x58] sm:$0xff] %v893_v19  ;;  %v816_v44 = vsel %vm815_vm2, %v2058_v35, %v814_v43  ;;  %v807_v54 = vmul.f32 %v1343_v36, %v2064_v47  ;;  %1348 = vpow2.f32 %v870_v50  ;;  %v924_v53 = vadd.f32 %v923_v39, %v2040_v63 }
 0x157   :  { %955 = vadd.xlane.f32.xlu0 %v890_v18  ;;  %v819_v23 = vsel %vm817_vm5, %v818_v34, %v816_v44  ;;  %v828_v59 = vmul.f32 %v1345_v42, %v2082_v21  ;;  %v1347_v4 = vpop.eup %1346  ;;  %v36_v18 = vld [vmem:[%s2404_s2 + $0x70] sm:$0xff] }
 0x158   :  { %961 = vadd.xlane.f32.xlu1 %v893_v19  ;;  %v847_v7 = vmul.f32 -0.5, %v819_v23  ;;  %v809_v62 = vsel %vm808_vm10, %v2064_v47, %v807_v54  ;;  %v821_v24 = vmul.f32 %v1347_v4, %v2091_v2 }
 0x159   :  { %v812_v10 = vsel %vm810_vm13, %v811_v32, %v809_v62  ;;  %v830_v1 = vsel %vm829_vm15, %v2082_v21, %v828_v59 }
 0x15a   :  { %v876_v60 = vmul.f32 1.442695, %v847_v7  ;;  %v846_v14 = vmul.f32 -0.5, %v812_v10  ;;  %v833_v40 = vsel %vm831_vm0, %v832_v56, %v830_v1  ;;  %v823_v57 = vsel %vm822_vm4, %v2091_v2, %v821_v24 }
 0x15b   :  { %v849_v63 = vmul.f32 -0.5, %v833_v40  ;;  %v826_v0 = vsel %vm824_vm8, %v825_v48, %v823_v57 }
 0x15c   :  { %1350 = vpow2.f32 %v876_v60  ;;  %v874_v46 = vmul.f32 1.442695, %v846_v14  ;;  %v925_v35 = vadd.f32 %v924_v53, %v846_v14  ;;  %v848_v17 = vmul.f32 -0.5, %v826_v0 }
 0x15d   :  { %v880_v47 = vmul.f32 1.442695, %v849_v63 }
 0x15e   :  { %1352 = vpow2.f32 %v874_v46  ;;  %v926_v13 = vadd.f32 %v925_v35, %v847_v7  ;;  %v878_v29 = vmul.f32 1.442695, %v848_v17 }
 0x15f   :  { %1354 = vpow2.f32 %v880_v47 }
 0x160   :  { %v927_v33 = vadd.f32 %v926_v13, %v848_v17  ;;  %v1349_v8 = vpop.eup %1348  ;;  %1356 = vpow2.f32 %v878_v29 }
 0x161   :  { %v892_v27 = vsel %vm636_vm1, 0.0, %v1349_v8  ;;  %vm1003_vm1 = vcmask 7168  }
 0x162   :  { %v928_v21 = vadd.f32 %v927_v33, %v849_v63  ;;  %908 = vst [vmem:[#allocation4 + $0x50] sm:$0xff] %v892_v27  ;;  %959 = vadd.xlane.f32.xlu0 %v892_v27 }
 0x166   :  { %v1351_v61 = vpop.eup %1350 }
 0x167   :  { %v895_v15 = vsel %vm639_vm6, 0.0, %v1351_v61 }
 0x168   :  { %v1353_v2 = vpop.eup %1352  ;;  %911 = vst [vmem:[#allocation4 + $0x68] sm:$0xff] %v895_v15  ;;  %965 = vadd.xlane.f32.xlu1 %v895_v15 }
 0x169   :  { %v1355_v31 = vpop.eup %1354  ;;  %v894_v11 = vsel %vm638_vm7, 0.0, %v1353_v2 }
 0x16a   :  { %910 = vst [vmem:[#allocation4 + $0x60] sm:$0xff] %v894_v11  ;;  %963 = vadd.xlane.f32.xlu0 %v894_v11  ;;  %v897_v28 = vsel %vm641_vm9, 0.0, %v1355_v31  ;;  %v1357_v25 = vpop.eup %1356 }
 0x16b   :  { %913 = vst [vmem:[#allocation4 + $0x78] sm:$0xff] %v897_v28  ;;  %v896_v45 = vsel %vm640_vm12, 0.0, %v1357_v25 }
 0x16c   :  { %969 = vadd.xlane.f32.xlu1 %v897_v28  ;;  %912 = vst [vmem:[#allocation4 + $0x70] sm:$0xff] %v896_v45 }
 0x16e   :  { %967 = vadd.xlane.f32.xlu0 %v896_v45 }
 0x17d   :  { %46 = vperm.xlu1 %1291, %v23_v51  }
 0x181   :  { %51 = vperm.xlu1 %1291, %v2170_v3  }
 0x184   :  { %41 = vperm.xlu0 %1290, %v2176_v52  }
 0x185   :  { %56 = vperm.xlu1 %1291, %v2181_v38  }
 0x188   :  { %76 = vperm.xlu0 %1290, %v2188_v6  }
 0x189   :  { %61 = vperm.xlu1 %1291, %v26_v26  }
 0x18c   :  { %86 = vperm.xlu0 %1290, %v2197_v55  }
 0x18d   :  { %66 = vperm.xlu1 %1291, %v2202_v41  }
 0x190   :  { %96 = vperm.xlu0 %1290, %v2209_v12  }
 0x191   :  { %71 = vperm.xlu1 %1291, %v28_v9  }
 0x194   :  { %106 = vperm.xlu0 %1290, %v2218_v49  }
 0x195   :  { %81 = vperm.xlu1 %1291, %v30_v16  }
 0x198   :  { %116 = vperm.xlu0 %1290, %v2227_v20  }
 0x199   :  { %91 = vperm.xlu1 %1291, %v32_v30  }
 0x19c   :  { %1293 = vset.pattern.permute.xlu0 %v1461_v37 }
 0x19d   :  { %101 = vperm.xlu1 %1291, %v34_v5   ;;  %177 = vperm.xlu0 %1293, %v23_v51  }
 0x1a1   :  { %111 = vperm.xlu1 %1291, %v36_v18   ;;  %189 = vperm.xlu0 %1293, %v26_v26  }
 0x1a5   :  { %197 = vperm.xlu0 %1293, %v28_v9   ;;  %1292 = vset.pattern.permute.xlu1 %v1461_v37 }
 0x1a9   :  { %205 = vperm.xlu0 %1293, %v30_v16  }
 0x1ad   :  { %213 = vperm.xlu0 %1293, %v32_v30  }
 0x1b1   :  { %221 = vperm.xlu0 %1293, %v34_v5  }
 0x1b5   :  { %229 = vperm.xlu0 %1293, %v36_v18  }
 0x1c5   :  { %929 = vadd.xlane.f32.xlu1 %v928_v21 }
 0x1cb   :  { %v942_v22 = vpop.xlane.xlu1 %941 }
 0x1cc   :  { %1358 = vlog2.f32 %v942_v22 }
 0x1d3   :  { %v940_v34 = vpop.xlane.xlu0 %939 }
 0x1d4   :  { %1360 = vlog2.f32 %v940_v34 }
 0x1d5   :  { %v946_v58 = vpop.xlane.xlu1 %945 }
 0x1d6   :  { %1362 = vlog2.f32 %v946_v58  ;;  %v1359_v36 = vpop.eup %1358 }
 0x1d7   :  { %v974_v42 = vmul.f32 0.6931472, %v1359_v36 }
 0x1d8   :  { %v944_v43 = vpop.xlane.xlu0 %943 }
 0x1d9   :  { %1364 = vlog2.f32 %v944_v43  ;;  %v950_v32 = vpop.xlane.xlu1 %949  ;;  %v1005_v23 = vsel %vm1003_vm1, %v974_v42, 0.0 }
 0x1da   :  { %1366 = vlog2.f32 %v950_v32 }
 0x1dc   :  { %v948_v19 = vpop.xlane.xlu0 %947 }
 0x1dd   :  { %1368 = vlog2.f32 %v948_v19  ;;  %v954_v50 = vpop.xlane.xlu1 %953 }
 0x1de   :  { %v1361_v39 = vpop.eup %1360  ;;  %1370 = vlog2.f32 %v954_v50  ;;  %v2253_v50 = vld [vmem:[%s2405_s3] ss:$0 sm:$0xff] }
 0x1df   :  { %v972_v44 = vmul.f32 0.6931472, %v1361_v39 }
 0x1e0   :  { %v952_v54 = vpop.xlane.xlu0 %951  ;;  %v1363_v56 = vpop.eup %1362 }
 0x1e1   :  { %1372 = vlog2.f32 %v952_v54  ;;  %v1004_v59 = vsel %vm1003_vm1, %v972_v44, 0.0  ;;  %v978_v4 = vmul.f32 0.6931472, %v1363_v56  ;;  %v958_v24 = vpop.xlane.xlu1 %957 }
 0x1e2   :  { %v1006_v10 = vadd.f32 %v1005_v23, %v1004_v59 }
 0x1e3   :  { %v1365_v53 = vpop.eup %1364  ;;  %v1009_v40 = vsel %vm1003_vm1, %v978_v4, 0.0 }
 0x1e4   :  { %v976_v7 = vmul.f32 0.6931472, %v1365_v53  ;;  %v956_v62 = vpop.xlane.xlu0 %955  ;;  %v1367_v48 = vpop.eup %1366 }
 0x1e5   :  { %1374 = vlog2.f32 %v956_v62  ;;  %v982_v63 = vmul.f32 0.6931472, %v1367_v48  ;;  %v962_v8 = vpop.xlane.xlu1 %961 }
 0x1e6   :  { %v1007_v1 = vsel %vm1003_vm1, %v976_v7, 0.0  ;;  %1376 = vlog2.f32 %v958_v24 }
 0x1e7   :  { %v1369_v60 = vpop.eup %1368  ;;  %v1008_v14 = vadd.f32 %v1007_v1, %v1006_v10  ;;  %v1013_v13 = vsel %vm1003_vm1, %v982_v63, 0.0  ;;  %1378 = vlog2.f32 %v962_v8 }
 0x1e8   :  { %v980_v57 = vmul.f32 0.6931472, %v1369_v60  ;;  %v1371_v0 = vpop.eup %1370 }
 0x1e9   :  { %v1010_v46 = vadd.f32 %v1009_v40, %v1008_v14  ;;  %v986_v27 = vmul.f32 0.6931472, %v1371_v0 }
 0x1ea   :  { %v1011_v35 = vsel %vm1003_vm1, %v980_v57, 0.0 }
 0x1eb   :  { %v1373_v47 = vpop.eup %1372  ;;  %v1012_v17 = vadd.f32 %v1011_v35, %v1010_v46  ;;  %v1017_v11 = vsel %vm1003_vm1, %v986_v27, 0.0 }
 0x1ec   :  { %v984_v29 = vmul.f32 0.6931472, %v1373_v47 }
 0x1ed   :  { %v1014_v33 = vadd.f32 %v1013_v13, %v1012_v17 }
 0x1ee   :  { %v1015_v21 = vsel %vm1003_vm1, %v984_v29, 0.0 }
 0x1ef   :  { %v1375_v61 = vpop.eup %1374  ;;  %v1016_v15 = vadd.f32 %v1015_v21, %v1014_v33  ;;  %v960_v31 = vpop.xlane.xlu0 %959 }
 0x1f0   :  { %v988_v2 = vmul.f32 0.6931472, %v1375_v61  ;;  %1380 = vlog2.f32 %v960_v31  ;;  %v1377_v28 = vpop.eup %1376 }
 0x1f1   :  { %v1018_v25 = vadd.f32 %v1017_v11, %v1016_v15  ;;  %v990_v26 = vmul.f32 0.6931472, %v1377_v28  ;;  %v1379_v5 = vpop.eup %1378 }
 0x1f2   :  { %v1019_v45 = vsel %vm1003_vm1, %v988_v2, 0.0  ;;  %v994_v43 = vmul.f32 0.6931472, %v1379_v5 }
 0x1f3   :  { %v1020_v9 = vadd.f32 %v1019_v45, %v1018_v25  ;;  %v1021_v37 = vsel %vm1003_vm1, %v990_v26, 0.0 }
 0x1f4   :  { %v1025_v42 = vsel %vm1003_vm1, %v994_v43, 0.0 }
 0x1f5   :  { %v966_v51 = vpop.xlane.xlu1 %965  ;;  %v1022_v22 = vadd.f32 %v1021_v37, %v1020_v9 }
 0x1f6   :  { %1382 = vlog2.f32 %v966_v51  ;;  %v2300_v51 = vld [vmem:[%s2405_s3 + $0x1] ss:$0 sm:$0xff]  ;;  %s1462_s3 = smov [#allocation4]  }
 0x1f7   :  { %v964_v16 = vpop.xlane.xlu0 %963  ;;  %s1065_s28 = sshll.u32 %s1462_s3, 4  ;;  %s1066_s28 = int_to_ptr.vmem [resolvable:$true] %s1065_s28 }
 0x1f8   :  { %1384 = vlog2.f32 %v964_v16  ;;  %s1390_s0 = scalar_lea.vmem %s1066_s28, 2048  ;;  %p1395_p1 = scmp.lt.s32.totalorder %s1066_s28, %s1066_s28 }
 0x1f9   :  { %v970_v30 = vpop.xlane.xlu1 %969  ;;  %p1391_p0 = scmp.ne.s32.totalorder %s1066_s28, %s1390_s0  ;;  %p1396_p2 = scmp.lt.s32.totalorder %s1390_s0, %s1390_s0 }
 0x1fa   :  { %1386 = vlog2.f32 %v970_v30  ;;  %v1381_v18 = vpop.eup %1380 }
 0x1fb   :  { %v968_v34 = vpop.xlane.xlu0 %967  ;;  %v992_v58 = vmul.f32 0.6931472, %v1381_v18  ;;  %p1397_p3 = por %p1396_p2, %p1395_p1 }
 0x1fc   :  { %1388 = vlog2.f32 %v968_v34 }
 0x1fd   :  { %v47_v32 = vpop.permute.xlu1 %46  ;;  %v1023_v36 = vsel %vm1003_vm1, %v992_v58, 0.0  ;;  %p1398_p4 = pnand %p1397_p3, %p1391_p0 }
 0x1fe   :  { %v1024_v19 = vadd.f32 %v1023_v36, %v1022_v22  ;;  %v124_v45 = vsub.f32 %v47_v32, %v2253_v50 }
 0x200   :  { %v1383_v39 = vpop.eup %1382  ;;  %v1026_v56 = vadd.f32 %v1025_v42, %v1024_v19  ;;  %v140_v16 = vand.u32 2147483647, %v124_v45 }
 0x201   :  { %v2256_v44 = vpop.permute.xlu1 %51  ;;  %v998_v59 = vmul.f32 0.6931472, %v1383_v39 }
 0x202   :  { %v1385_v54 = vpop.eup %1384  ;;  %v125_v23 = vsub.f32 %v2256_v44, %v2253_v50 }
 0x203   :  { %v996_v53 = vmul.f32 0.6931472, %v1385_v54  ;;  %v2260_v4 = vpop.permute.xlu0 %41  ;;  %v1029_v14 = vsel %vm1003_vm1, %v998_v59, 0.0 }
 0x204   :  { %v1387_v7 = vpop.eup %1386  ;;  %v123_v62 = vsub.f32 %v2260_v4, %v2253_v50 }
 0x205   :  { %v1027_v48 = vsel %vm1003_vm1, %v996_v53, 0.0  ;;  %v2265_v10 = vpop.permute.xlu1 %56  ;;  %v1002_v40 = vmul.f32 0.6931472, %v1387_v7 }
 0x206   :  { %v1389_v1 = vpop.eup %1388  ;;  %v1028_v24 = vadd.f32 %v1027_v48, %v1026_v56  ;;  %v126_v60 = vsub.f32 %v2265_v10, %v2253_v50 }
 0x207   :  { %v1000_v63 = vmul.f32 0.6931472, %v1389_v1  ;;  %v2270_v57 = vpop.permute.xlu0 %76  ;;  %v1033_v13 = vsel %vm1003_vm1, %v1002_v40, 0.0 }
 0x208   :  { %v1030_v46 = vadd.f32 %v1029_v14, %v1028_v24  ;;  %v130_v0 = vsub.f32 %v2270_v57, %v2253_v50 }
 0x209   :  { %v1031_v35 = vsel %vm1003_vm1, %v1000_v63, 0.0  ;;  %v62_v47 = vpop.permute.xlu1 %61 }
 0x20a   :  { %v1032_v17 = vadd.f32 %v1031_v35, %v1030_v46  ;;  %v127_v30 = vsub.f32 %v62_v47, %v2253_v50 }
 0x20b   :  { %v2276_v29 = vpop.permute.xlu0 %86 }
 0x20c   :  { %v1034_v33 = vadd.f32 %v1033_v13, %v1032_v17  ;;  %v132_v8 = vsub.f32 %v2276_v29, %v2253_v50  ;;  %v143_v22 = vand.u32 2147483647, %v127_v30 }
 0x20d   :  { %v2280_v27 = vpop.permute.xlu1 %66 }
 0x20e   :  { %1035 = vadd.xlane.f32.xlu1 %v1034_v33  ;;  %v128_v21 = vsub.f32 %v2280_v27, %v2253_v50 }
 0x20f   :  { %v2284_v61 = vpop.permute.xlu0 %96 }
 0x210   :  { %v134_v15 = vsub.f32 %v2284_v61, %v2253_v50 }
 0x211   :  { %v72_v11 = vpop.permute.xlu1 %71 }
 0x212   :  { %v129_v43 = vsub.f32 %v72_v11, %v2253_v50 }
 0x213   :  { %v2288_v2 = vpop.permute.xlu0 %106 }
 0x214   :  { %v136_v31 = vsub.f32 %v2288_v2, %v2253_v50  ;;  %v145_v42 = vand.u32 2147483647, %v129_v43 }
 0x215   :  { %v82_v9 = vpop.permute.xlu1 %81 }
 0x217   :  { %v2292_v28 = vpop.permute.xlu0 %116 }
 0x218   :  { %v138_v25 = vsub.f32 %v2292_v28, %v2253_v50 }
 0x219   :  { %v92_v32 = vpop.permute.xlu1 %91 }
 0x21c   :  { %v178_v26 = vpop.permute.xlu0 %177 }
 0x21d   :  { %v241_v5 = vsub.f32 %v178_v26, %v2300_v51  ;;  %v102_v53 = vpop.permute.xlu1 %101 }
 0x21f   :  { %173 = vperm.xlu1 %1292, %v2176_v52   ;;  %v257_v37 = vand.u32 2147483647, %v241_v5  ;;  %v131_v52 = vsub.f32 %v82_v9, %v2253_v50 }
 0x220   :  { %v190_v18 = vpop.permute.xlu0 %189 }
 0x221   :  { %v273_v34 = vadd.f32 %v257_v37, %v140_v16  ;;  %v244_v58 = vsub.f32 %v190_v18, %v2300_v51  ;;  %v147_v48 = vand.u32 2147483647, %v131_v52  ;;  %v112_v35 = vpop.permute.xlu1 %111 }
 0x223   :  { %181 = vperm.xlu1 %1292, %v2170_v3   ;;  %289 = vst [vmem:[#allocation2 + $0x8] sm:$0xff] %v273_v34  ;;  %v260_v36 = vand.u32 2147483647, %v244_v58  ;;  %v133_v3 = vsub.f32 %v92_v32, %v2253_v50 }
 0x224   :  { %v198_v19 = vpop.permute.xlu0 %197 }
 0x225   :  { %v276_v39 = vadd.f32 %v260_v36, %v143_v22  ;;  %v246_v54 = vsub.f32 %v198_v19, %v2300_v51  ;;  %v149_v63 = vand.u32 2147483647, %v133_v3 }
 0x227   :  { %185 = vperm.xlu1 %1292, %v2181_v38   ;;  %292 = vst [vmem:[#allocation2 + $0x20] sm:$0xff] %v276_v39  ;;  %v262_v56 = vand.u32 2147483647, %v246_v54  ;;  %v135_v38 = vsub.f32 %v102_v53, %v2253_v50 }
 0x228   :  { %v206_v59 = vpop.permute.xlu0 %205 }
 0x229   :  { %v278_v7 = vadd.f32 %v262_v56, %v145_v42  ;;  %v248_v1 = vsub.f32 %v206_v59, %v2300_v51  ;;  %v151_v33 = vand.u32 2147483647, %v135_v38 }
 0x22b   :  { %193 = vperm.xlu1 %1292, %v2202_v41   ;;  %294 = vst [vmem:[#allocation2 + $0x30] sm:$0xff] %v278_v7  ;;  %v264_v24 = vand.u32 2147483647, %v248_v1  ;;  %v137_v41 = vsub.f32 %v112_v35, %v2253_v50 }
 0x22c   :  { %v214_v14 = vpop.permute.xlu0 %213 }
 0x22d   :  { %v280_v40 = vadd.f32 %v264_v24, %v147_v48  ;;  %v250_v46 = vsub.f32 %v214_v14, %v2300_v51  ;;  %v153_v16 = vand.u32 2147483647, %v137_v41 }
 0x22f   :  { %201 = vperm.xlu1 %1292, %v2188_v6   ;;  %296 = vst [vmem:[#allocation2 + $0x40] sm:$0xff] %v280_v40  ;;  %v266_v47 = vand.u32 2147483647, %v250_v46 }
 0x230   :  { %v222_v17 = vpop.permute.xlu0 %221 }
 0x231   :  { %v282_v13 = vadd.f32 %v266_v47, %v149_v63  ;;  %v252_v11 = vsub.f32 %v222_v17, %v2300_v51 }
 0x233   :  { %209 = vperm.xlu1 %1292, %v2197_v55   ;;  %298 = vst [vmem:[#allocation2 + $0x50] sm:$0xff] %v282_v13  ;;  %v268_v45 = vand.u32 2147483647, %v252_v11 }
 0x234   :  { %v230_v26 = vpop.permute.xlu0 %229 }
 0x235   :  { %v284_v9 = vadd.f32 %v268_v45, %v151_v33  ;;  %v254_v30 = vsub.f32 %v230_v26, %v2300_v51 }
 0x237   :  { %217 = vperm.xlu1 %1292, %v2209_v12   ;;  %300 = vst [vmem:[#allocation2 + $0x60] sm:$0xff] %v284_v9  ;;  %v270_v6 = vand.u32 2147483647, %v254_v30 }
 0x239   :  { %v286_v5 = vadd.f32 %v270_v6, %v153_v16 }
 0x23b   :  { %225 = vperm.xlu1 %1292, %v2218_v49   ;;  %302 = vst [vmem:[#allocation2 + $0x70] sm:$0xff] %v286_v5 }
 0x23f   :  { %233 = vperm.xlu1 %1292, %v2227_v20  }
 0x252   :  { %v930_v37 = vpop.xlane.xlu1 %929 }
 0x253   :  { %v931_v18 = vrot.slane %v930_v37, 4 }
 0x255   :  { %v932_v55 = vadd.f32 %v931_v18, %v930_v37 }
 0x257   :  { %v933_v22 = vrot.slane %v932_v55, 2 }
 0x259   :  { %v934_v34 = vadd.f32 %v933_v22, %v932_v55 }
 0x25b   :  { %v935_v58 = vrot.slane %v934_v34, 1 }
 0x25d   :  { %v936_v43 = vadd.f32 %v935_v58, %v934_v34 }
 0x25f   :  { %1279 = vpush %v936_v43 }
 0x260   :  { %1401 = shalt.err (!%p1398_p4)
}
 0x261   :  { %s1402_s7 = scalar_lea.hbm %s2407_s5, 2048 }
 0x262   :  { %p1403_p5 = scmp.ne.s32.totalorder %s2407_s5, %s1402_s7  ;;  %p1406_p6 = scmp.lt.u32.totalorder %s1402_s7, %s2407_s5 }
 0x264   :  { %p1408_p7 = pnand %p1406_p6, %p1403_p5 }
 0x266   :  { %1411 = shalt.err (!%p1408_p7)
}
 0x267   :  { %s1463_s12 = smov 128   ;;  %s1464_s13 = smov 8   ;;  %v139_v36 = vand.u32 2147483647, %v123_v62  ;;  %v141_v7 = vand.u32 2147483647, %v125_v23 }
 0x268   :  { %1071 = dma.vmem_to_hbm [thread:$0]  %s1066_s28, 2048, %s2407_s5, [#allocation5], %s1463_s12, %s1463_s12, %s1464_s13   ;;  %v142_v24 = vand.u32 2147483647, %v126_v60  ;;  %v144_v44 = vand.u32 2147483647, %v128_v21 }
 0x269   :  { %v146_v10 = vand.u32 2147483647, %v130_v0  ;;  %v148_v27 = vand.u32 2147483647, %v132_v8  ;;  %v150_v57 = vand.u32 2147483647, %v134_v15 }
 0x26a   :  { %v152_v29 = vand.u32 2147483647, %v136_v31  ;;  %s1465_s5 = smov [#allocation2]   ;;  %v154_v61 = vand.u32 2147483647, %v138_v25 }
 0x26b   :  { %s1053_s16 = sshll.u32 %s1465_s5, 4  ;;  %s1054_s16 = int_to_ptr.vmem [resolvable:$true] %s1053_s16 }
 0x26c   :  { %s1412_s17 = scalar_lea.vmem %s1054_s16, 2048  ;;  %p1417_p9 = scmp.lt.s32.totalorder %s1054_s16, %s1054_s16 }
 0x26d   :  { %p1413_p8 = scmp.ne.s32.totalorder %s1054_s16, %s1412_s17  ;;  %p1418_p10 = scmp.lt.s32.totalorder %s1412_s17, %s1412_s17 }
 0x26f   :  { %p1419_p11 = por %p1418_p10, %p1417_p9 }
 0x271   :  { %p1420_p12 = pnand %p1419_p11, %p1413_p8 }
 0x29b   :  { %v1036_v12 = vpop.xlane.xlu1 %1035 }
 0x29c   :  { %v1037_v49 = vrot.slane %v1036_v12, 4 }
 0x29e   :  { %v1038_v20 = vadd.f32 %v1037_v49, %v1036_v12 }
 0x29f   :  { %v174_v32 = vpop.permute.xlu1 %173 }
 0x2a0   :  { %v1039_v19 = vrot.slane %v1038_v20, 2  ;;  %v240_v39 = vsub.f32 %v174_v32, %v2300_v51 }
 0x2a2   :  { %v256_v42 = vand.u32 2147483647, %v240_v39  ;;  %v1040_v54 = vadd.f32 %v1039_v19, %v1038_v20 }
 0x2a3   :  { %v182_v52 = vpop.permute.xlu1 %181 }
 0x2a4   :  { %v272_v56 = vadd.f32 %v256_v42, %v139_v36  ;;  %v242_v59 = vsub.f32 %v182_v52, %v2300_v51  ;;  %v1041_v53 = vrot.slane %v1040_v54, 1 }
 0x2a6   :  { %288 = vst [vmem:[#allocation2] sm:$0xff] %v272_v56  ;;  %v258_v48 = vand.u32 2147483647, %v242_v59  ;;  %v1042_v1 = vadd.f32 %v1041_v53, %v1040_v54 }
 0x2a7   :  { %v186_v3 = vpop.permute.xlu1 %185 }
 0x2a8   :  { %v274_v4 = vadd.f32 %v258_v48, %v141_v7  ;;  %v243_v62 = vsub.f32 %v186_v3, %v2300_v51  ;;  %1281 = vpush %v1042_v1 }
 0x2aa   :  { %290 = vst [vmem:[#allocation2 + $0x10] sm:$0xff] %v274_v4  ;;  %v259_v14 = vand.u32 2147483647, %v243_v62 }
 0x2ab   :  { %v194_v40 = vpop.permute.xlu1 %193 }
 0x2ac   :  { %v275_v63 = vadd.f32 %v259_v14, %v142_v24  ;;  %v245_v46 = vsub.f32 %v194_v40, %v2300_v51 }
 0x2ae   :  { %291 = vst [vmem:[#allocation2 + $0x18] sm:$0xff] %v275_v63  ;;  %v261_v23 = vand.u32 2147483647, %v245_v46 }
 0x2af   :  { %v202_v38 = vpop.permute.xlu1 %201 }
 0x2b0   :  { %v277_v35 = vadd.f32 %v261_v23, %v144_v44  ;;  %v247_v47 = vsub.f32 %v202_v38, %v2300_v51 }
 0x2b2   :  { %293 = vst [vmem:[#allocation2 + $0x28] sm:$0xff] %v277_v35  ;;  %v263_v60 = vand.u32 2147483647, %v247_v47 }
 0x2b3   :  { %v210_v17 = vpop.permute.xlu1 %209 }
 0x2b4   :  { %v279_v13 = vadd.f32 %v263_v60, %v146_v10  ;;  %v249_v33 = vsub.f32 %v210_v17, %v2300_v51 }
 0x2b6   :  { %295 = vst [vmem:[#allocation2 + $0x38] sm:$0xff] %v279_v13  ;;  %v265_v21 = vand.u32 2147483647, %v249_v33 }
 0x2b7   :  { %v218_v11 = vpop.permute.xlu1 %217 }
 0x2b8   :  { %v281_v41 = vadd.f32 %v265_v21, %v148_v27  ;;  %v251_v45 = vsub.f32 %v218_v11, %v2300_v51 }
 0x2ba   :  { %297 = vst [vmem:[#allocation2 + $0x48] sm:$0xff] %v281_v41  ;;  %v267_v0 = vand.u32 2147483647, %v251_v45 }
 0x2bb   :  { %v226_v26 = vpop.permute.xlu1 %225 }
 0x2bc   :  { %v283_v9 = vadd.f32 %v267_v0, %v150_v57  ;;  %v253_v16 = vsub.f32 %v226_v26, %v2300_v51 }
 0x2be   :  { %299 = vst [vmem:[#allocation2 + $0x58] sm:$0xff] %v283_v9  ;;  %v269_v8 = vand.u32 2147483647, %v253_v16 }
 0x2bf   :  { %v234_v30 = vpop.permute.xlu1 %233 }
 0x2c0   :  { %v285_v6 = vadd.f32 %v269_v8, %v152_v29  ;;  %v255_v5 = vsub.f32 %v234_v30, %v2300_v51 }
 0x2c2   :  { %301 = vst [vmem:[#allocation2 + $0x68] sm:$0xff] %v285_v6  ;;  %v271_v15 = vand.u32 2147483647, %v255_v5 }
 0x2c4   :  { %v287_v37 = vadd.f32 %v271_v15, %v154_v61 }
 0x2c6   :  { %303 = vst [vmem:[#allocation2 + $0x78] sm:$0xff] %v287_v37 }
 0x2c7   :  { %1423 = shalt.err (!%p1420_p12)
}
 0x2c8   :  { %s1424_s1 = scalar_lea.hbm %s2406_s4, 2048 }
 0x2c9   :  { %p1425_p13 = scmp.ne.s32.totalorder %s2406_s4, %s1424_s1  ;;  %p1428_p0 = scmp.lt.u32.totalorder %s1424_s1, %s2406_s4 }
 0x2cb   :  { %p1430_p1 = pnand %p1428_p0, %p1425_p13 }
 0x2cd   :  { %1433 = shalt.err (!%p1430_p1)
}
 0x2ce   :  { %1059 = dma.vmem_to_hbm [thread:$0]  %s1054_s16, 2048, %s2406_s4, [#allocation3], %s1463_s12, %s1463_s12, %s1464_s13   ;;  %vm1046_vm6 = vcmask 0  }
 0x2cf   :  { %s1280_s25 = spop %1279  ;;  %s1466_s26 = smov [#allocation6]  }
 0x2d0   :  { %s1078_s27 = sshll.u32 %s1466_s26, 4  ;;  %v938_v50 = vstv %s1280_s25  ;;  %s1079_s27 = int_to_ptr.vmem [resolvable:$true] %s1078_s27 }
 0x2d1   :  { %s1434_s28 = scalar_lea.vmem %s1079_s27, 16  ;;  %s1438_s0 = scalar_lea.vmem %s1079_s27, 32 }
 0x2d2   :  { %p1435_p2 = scmp.ne.s32.totalorder %s1079_s27, %s1434_s28  ;;  %p1439_p3 = scmp.lt.s32.totalorder %s1079_s27, %s1079_s27 }
 0x2d3   :  { %p1440_p4 = scmp.lt.s32.totalorder %s1438_s0, %s1434_s28 }
 0x2d5   :  { %p1441_p5 = por %p1440_p4, %p1439_p3 }
 0x2d7   :  { %p1442_p6 = pnand %p1441_p5, %p1435_p2 }
 0x2d9   :  { %s1282_s3 = spop %1281 }
 0x2da   :  { %v1044_v2 = vstv %s1282_s3 }
 0x2db   :  { %v1045_v31 = vadd.f32 %v1044_v2, %v938_v50 }
 0x2dd   :  { %1047 = vst.msk [vmem:[#allocation6] sm:$0x1] %vm1046_vm6, %v1045_v31 }
 0x2de   :  { %1445 = shalt.err (!%p1442_p6)
}
 0x2df   :  { %s1446_s30 = scalar_lea.hbm %s2408_s6, 16 }
 0x2e0   :  { %p1447_p7 = scmp.ne.s32.totalorder %s2408_s6, %s1446_s30  ;;  %p1450_p8 = scmp.lt.u32.totalorder %s1446_s30, %s2408_s6 }
 0x2e2   :  { %p1452_p9 = pnand %p1450_p8, %p1447_p7 }
 0x2e4   :  { %1455 = shalt.err (!%p1452_p9)
}
 0x2e5   :  { %1081 = dma.vmem_to_hbm [thread:$0]  %s1079_s27, 16, %s2408_s6, [#allocation5]  }
 0x2e6   :  { %1456 = dma.done.wait [#allocation3], 2048  }
 0x2e7   :  { %1457 = vsyncadd [#allocation3], 4294965248 }
 0x2e8   :  { %1458 = dma.done.wait [#allocation5], 2064  }
 0x2e9   :  { %1459 = vsyncadd [#allocation5], 4294965232 }
 0x2ea   :  { %1091 = vsyncpa [#allocation3], 1 }
 0x2eb   :  { %1092 = vsyncpa [#allocation5], 1 }

</bundles_post_ra>
